<compile_context>
chip_gen: v7x
topology: tpu7x:2x2x1
jax: 0.10.0
libtpu: 0.0.40
codegen_flags: <defaults>
</compile_context>

<pallas_src>
import jax
import jax.numpy as jnp
from jax.experimental import pallas as pl
from jax.experimental.pallas import tpu as pltpu

EPS = 1e-6


def _iou_kernel(out_ref, lbl_ref, iou_ref, inter_acc, union_acc):
    # out_ref, lbl_ref: (T_NC, T_HW) VMEM tiles.
    # iou_ref:          (T_NC, 1) output (per-(N,C) IoU), resident across j.
    # inter_acc/union_acc: (T_NC, 1) f32 VMEM scratch accumulators.
    j = pl.program_id(1)

    @pl.when(j == 0)
    def _():
        inter_acc[...] = jnp.zeros_like(inter_acc)
        union_acc[...] = jnp.zeros_like(union_acc)

    # Match torch semantics exactly: .int() truncation + bitwise & / |.
    # (If inputs were guaranteed {0,1} this could be o*l / max(o,l) in float,
    # but we keep the general int path for correctness.)
    o = out_ref[...].astype(jnp.int32)
    l = lbl_ref[...].astype(jnp.int32)

    inter_acc[...] += jnp.sum((o & l).astype(jnp.float32), axis=1, keepdims=True)
    union_acc[...] += jnp.sum((o | l).astype(jnp.float32), axis=1, keepdims=True)

    @pl.when(j == pl.num_programs(1) - 1)
    def _():
        iou_ref[...] = (inter_acc[...] + EPS) / (union_acc[...] + EPS)


def _round_up(x, m):
    return (x + m - 1) // m * m


def iou_score(outputs, labels):
    """outputs, labels: (N, C, H, W) arrays. Returns scalar f32 mean IoU."""
    N, C, H, W = outputs.shape
    NC, HW = N * C, H * W

    o2 = outputs.reshape(NC, HW).astype(jnp.float32)
    l2 = labels.reshape(NC, HW).astype(jnp.float32)

    # Row tile: multiple of 8 sublanes, capped at 64 rows.
    T_NC = min(_round_up(NC, 8), 64)
    NC_pad = _round_up(NC, T_NC)
    # Reduction tile: multiple of 128 lanes, capped so one f32 block <= ~2 MiB
    # (2 inputs x 2 pipeline buffers => <= ~8 MiB of VMEM buffering).
    max_thw = max(512, ((512 * 1024) // T_NC) // 128 * 128)
    T_HW = min(_round_up(HW, 128), max_thw)
    HW_pad = _round_up(HW, T_HW)

    # Zero padding is exact: 0&x=0 and 0|0=0 contribute nothing to the sums,
    # and padded rows are excluded from the mean below.
    if (NC_pad, HW_pad) != (NC, HW):
        o2 = jnp.pad(o2, ((0, NC_pad - NC), (0, HW_pad - HW)))
        l2 = jnp.pad(l2, ((0, NC_pad - NC), (0, HW_pad - HW)))

    grid = (NC_pad // T_NC, HW_pad // T_HW)

    cost = pl.CostEstimate(
        flops=6 * NC_pad * HW_pad,
        transcendentals=0,
        bytes_accessed=2 * NC_pad * HW_pad * 4 + NC_pad * 4,
    )

    iou = pl.pallas_call(
        _iou_kernel,
        out_shape=jax.ShapeDtypeStruct((NC_pad, 1), jnp.float32),
        grid_spec=pltpu.PrefetchScalarGridSpec(
            num_scalar_prefetch=0,
            grid=grid,
            in_specs=[
                pl.BlockSpec((T_NC, T_HW), lambda i, j: (i, j)),
                pl.BlockSpec((T_NC, T_HW), lambda i, j: (i, j)),
            ],
            out_specs=pl.BlockSpec((T_NC, 1), lambda i, j: (i, 0)),
            scratch_shapes=[
                pltpu.VMEM((T_NC, 1), jnp.float32),
                pltpu.VMEM((T_NC, 1), jnp.float32),
            ],
        ),
        compiler_params=pltpu.CompilerParams(
            dimension_semantics=("parallel", "arbitrary"),
            vmem_limit_bytes=32 * 1024 * 1024,
        ),
        cost_estimate=cost,
    )(o2, l2)

    # Final mean over the original (unpadded) N*C rows — tiny epilogue.
    return jnp.sum(iou[:NC, 0]) / jnp.float32(NC)


def iou_score_ref(outputs, labels):
    """Pure-JAX reference mirroring the PyTorch module."""
    o = outputs.astype(jnp.int32)
    l = labels.astype(jnp.int32)
    inter = jnp.sum((o & l).astype(jnp.float32), axis=(2, 3))
    union = jnp.sum((o | l).astype(jnp.float32), axis=(2, 3))
    iou = (inter + EPS) / (union + EPS)
    return jnp.mean(iou)


if __name__ == "__main__":
    key = jax.random.PRNGKey(0)
    k1, k2 = jax.random.split(key)
    N, C, H, W = 2, 4, 16, 16
    # Binary masks stored as float32 (typical segmentation-metric input).
    outputs = jax.random.bernoulli(k1, 0.5, (N, C, H, W)).astype(jnp.float32)
    labels = jax.random.bernoulli(k2, 0.5, (N, C, H, W)).astype(jnp.float32)

    got = jax.block_until_ready(iou_score(outputs, labels))
    want = jax.block_until_ready(iou_score_ref(outputs, labels))

    assert jnp.allclose(got, want, rtol=1e-5, atol=1e-6), (got, want)
    print("KERNEL_OK")
</pallas_src>

<mosaic_0001>
module attributes {stable_mosaic.version = 11 : i64} {
  func.func @_iou_kernel(%arg0: i32, %arg1: i32, %arg2: memref<8x256xf32, #tpu.memory_space<vmem>>, %arg3: memref<8x256xf32, #tpu.memory_space<vmem>>, %arg4: memref<8x1xf32, #tpu.memory_space<vmem>>, %arg5: memref<8x1xf32, #tpu.memory_space<vmem>>, %arg6: memref<8x1xf32, #tpu.memory_space<vmem>>) attributes {dimension_semantics = [#tpu.dimension_semantics<parallel>, #tpu.dimension_semantics<arbitrary>], iteration_bounds = array<i64: 1, 1>, scalar_prefetch = 0 : i64, scratch_operands = 2 : i64, tpu.core_type = #tpu.core_type<tc>, window_params = [{transform_indices = @transform_0, window_bounds = array<i64: 8, 256>}, {transform_indices = @transform_1, window_bounds = array<i64: 8, 256>}, {transform_indices = @transform_2, window_bounds = array<i64: 8, 1>}]} {
    %c0_i32 = arith.constant 0 : i32
    %0 = arith.cmpi eq, %arg1, %c0_i32 : i32
    %1 = arith.extui %0 : i1 to i32
    %c0_i32_0 = arith.constant 0 : i32
    %2 = arith.cmpi ne, %1, %c0_i32_0 : i32
    scf.if %2 {
      %cst_15 = arith.constant 0.000000e+00 : f32
      %24 = vector.broadcast %cst_15 : f32 to vector<8x1xf32>
      %c0_16 = arith.constant 0 : index
      %c0_17 = arith.constant 0 : index
      %25 = vector.load %arg5[%c0_16, %c0_17] : memref<8x1xf32, #tpu.memory_space<vmem>>, vector<8x1xf32>
      tpu.vector_store %arg5[%c0_16, %c0_17], %24 {strides = array<i32>} : memref<8x1xf32, #tpu.memory_space<vmem>>, vector<8x1xf32>,
      %cst_18 = arith.constant 0.000000e+00 : f32
      %26 = vector.broadcast %cst_18 : f32 to vector<8x1xf32>
      %c0_19 = arith.constant 0 : index
      %c0_20 = arith.constant 0 : index
      %27 = vector.load %arg6[%c0_19, %c0_20] : memref<8x1xf32, #tpu.memory_space<vmem>>, vector<8x1xf32>
      tpu.vector_store %arg6[%c0_19, %c0_20], %26 {strides = array<i32>} : memref<8x1xf32, #tpu.memory_space<vmem>>, vector<8x1xf32>,
    } else {
    }
    %c0 = arith.constant 0 : index
    %c0_1 = arith.constant 0 : index
    %3 = vector.load %arg2[%c0, %c0_1] : memref<8x256xf32, #tpu.memory_space<vmem>>, vector<8x256xf32>
    %4 = arith.fptosi %3 : vector<8x256xf32> to vector<8x256xi32>
    %c0_2 = arith.constant 0 : index
    %c0_3 = arith.constant 0 : index
    %5 = vector.load %arg3[%c0_2, %c0_3] : memref<8x256xf32, #tpu.memory_space<vmem>>, vector<8x256xf32>
    %6 = arith.fptosi %5 : vector<8x256xf32> to vector<8x256xi32>
    %c0_4 = arith.constant 0 : index
    %c0_5 = arith.constant 0 : index
    %7 = vector.load %arg5[%c0_4, %c0_5] : memref<8x1xf32, #tpu.memory_space<vmem>>, vector<8x1xf32>
    %8 = arith.andi %4, %6 : vector<8x256xi32>
    %9 = arith.sitofp %8 : vector<8x256xi32> to vector<8x256xf32>
    %cst = arith.constant dense<0.000000e+00> : vector<8xf32>
    %10 = vector.multi_reduction <add>, %9, %cst [1] : vector<8x256xf32> to vector<8xf32>
    %11 = vector.shape_cast %10 : vector<8xf32> to vector<8x1xf32>
    %12 = arith.addf %7, %11 : vector<8x1xf32>
    %c0_6 = arith.constant 0 : index
    %c0_7 = arith.constant 0 : index
    %13 = vector.load %arg5[%c0_6, %c0_7] : memref<8x1xf32, #tpu.memory_space<vmem>>, vector<8x1xf32>
    tpu.vector_store %arg5[%c0_6, %c0_7], %12 {strides = array<i32>} : memref<8x1xf32, #tpu.memory_space<vmem>>, vector<8x1xf32>,
    %c0_8 = arith.constant 0 : index
    %c0_9 = arith.constant 0 : index
    %14 = vector.load %arg6[%c0_8, %c0_9] : memref<8x1xf32, #tpu.memory_space<vmem>>, vector<8x1xf32>
    %15 = arith.ori %4, %6 : vector<8x256xi32>
    %16 = arith.sitofp %15 : vector<8x256xi32> to vector<8x256xf32>
    %cst_10 = arith.constant dense<0.000000e+00> : vector<8xf32>
    %17 = vector.multi_reduction <add>, %16, %cst_10 [1] : vector<8x256xf32> to vector<8xf32>
    %18 = vector.shape_cast %17 : vector<8xf32> to vector<8x1xf32>
    %19 = arith.addf %14, %18 : vector<8x1xf32>
    %c0_11 = arith.constant 0 : index
    %c0_12 = arith.constant 0 : index
    %20 = vector.load %arg6[%c0_11, %c0_12] : memref<8x1xf32, #tpu.memory_space<vmem>>, vector<8x1xf32>
    tpu.vector_store %arg6[%c0_11, %c0_12], %19 {strides = array<i32>} : memref<8x1xf32, #tpu.memory_space<vmem>>, vector<8x1xf32>,
    %c0_i32_13 = arith.constant 0 : i32
    %21 = arith.cmpi eq, %arg1, %c0_i32_13 : i32
    %22 = arith.extui %21 : i1 to i32
    %c0_i32_14 = arith.constant 0 : i32
    %23 = arith.cmpi ne, %22, %c0_i32_14 : i32
    scf.if %23 {
      %c0_15 = arith.constant 0 : index
      %c0_16 = arith.constant 0 : index
      %24 = vector.load %arg5[%c0_15, %c0_16] : memref<8x1xf32, #tpu.memory_space<vmem>>, vector<8x1xf32>
      %cst_17 = arith.constant 9.99999997E-7 : f32
      %25 = vector.broadcast %cst_17 : f32 to vector<8x1xf32>
      %26 = arith.addf %24, %25 : vector<8x1xf32>
      %c0_18 = arith.constant 0 : index
      %c0_19 = arith.constant 0 : index
      %27 = vector.load %arg6[%c0_18, %c0_19] : memref<8x1xf32, #tpu.memory_space<vmem>>, vector<8x1xf32>
      %cst_20 = arith.constant 9.99999997E-7 : f32
      %28 = vector.broadcast %cst_20 : f32 to vector<8x1xf32>
      %29 = arith.addf %27, %28 : vector<8x1xf32>
      %30 = arith.divf %26, %29 : vector<8x1xf32>
      %c0_21 = arith.constant 0 : index
      %c0_22 = arith.constant 0 : index
      %31 = vector.load %arg4[%c0_21, %c0_22] : memref<8x1xf32, #tpu.memory_space<vmem>>, vector<8x1xf32>
      tpu.vector_store %arg4[%c0_21, %c0_22], %30 {strides = array<i32>} : memref<8x1xf32, #tpu.memory_space<vmem>>, vector<8x1xf32>,
    } else {
    }
    return
  }
  func.func @transform_0(%arg0: i32, %arg1: i32) -> (i32, i32) {
    %c0_i32 = arith.constant 0 : i32
    return %arg0, %arg1 : i32, i32
  }
  func.func @transform_1(%arg0: i32, %arg1: i32) -> (i32, i32) {
    %c0_i32 = arith.constant 0 : i32
    return %arg0, %arg1 : i32, i32
  }
  func.func @transform_2(%arg0: i32, %arg1: i32) -> (i32, i32) {
    %c0_i32 = arith.constant 0 : i32
    %c0_i32_0 = arith.constant 0 : i32
    return %arg0, %c0_i32 : i32, i32
  }
}

</mosaic_0001>

<bundles_post_ra>
// kernel: tpu_custom_call.1
= control target key start
LH: loop header
LB: loop body
LE: loop exit
PB: predicated region body
PF: predicated region fallthrough
CT: control target
= control target key end

     0   :  { %7 = vsyncpa [#allocation5], 0  ;;  %s198_s0 = inlined_call_operand.hbm [shape: f32[8,256], index: 0, kind: input, shape index: {}]   ;;  %s199_s1 = inlined_call_operand.hbm [shape: f32[8,256], index: 1, kind: input, shape index: {}]   ;;  %s200_s2 = inlined_call_operand.vmem [shape: f32[8,1], index: 2, kind: output, shape index: {}]  }
   0x1   :  { %8 = vsyncpa [#allocation7], 0  ;;  %s148_s9 = smov [#allocation4]   ;;  %s149_s11 = smov [#allocation6]  }
   0x2   :  { %s15_s10 = sshll.u32 %s148_s9, 4  ;;  %s25_s12 = sshll.u32 %s149_s11, 4  ;;  %s16_s10 = int_to_ptr.vmem [resolvable:$true] %s15_s10  ;;  %s26_s12 = int_to_ptr.vmem [resolvable:$true] %s25_s12 }
   0x3   :  { %s100_s15 = scalar_lea.hbm %s198_s0, 256 }
   0x4   :  { %p101_p0 = scmp.ne.s32.totalorder %s198_s0, %s100_s15  ;;  %p104_p1 = scmp.lt.u32.totalorder %s100_s15, %s198_s0 }
   0x6   :  { %p106_p2 = pnand %p104_p1, %p101_p0 }
   0x8   :  { %109 = shalt.err (!%p106_p2)
}
   0x9   :  { %s110_s20 = scalar_lea.vmem %s16_s10, 256  ;;  %p115_p4 = scmp.lt.s32.totalorder %s16_s10, %s16_s10 }
   0xa   :  { %p111_p3 = scmp.ne.s32.totalorder %s16_s10, %s110_s20  ;;  %p116_p5 = scmp.lt.s32.totalorder %s110_s20, %s110_s20 }
   0xc   :  { %p117_p6 = por %p116_p5, %p115_p4 }
   0xe   :  { %p118_p7 = pnand %p117_p6, %p111_p3 }
  0x10   :  { %121 = shalt.err (!%p118_p7)
}
  0x11   :  { %18 = dma.hbm_to_vmem [thread:$0]  %s198_s0, 256, %s16_s10, [#allocation5]  }
  0x12   :  { %s122_s25 = scalar_lea.hbm %s199_s1, 256 }
  0x13   :  { %p123_p8 = scmp.ne.s32.totalorder %s199_s1, %s122_s25  ;;  %p126_p9 = scmp.lt.u32.totalorder %s122_s25, %s199_s1 }
  0x15   :  { %p128_p10 = pnand %p126_p9, %p123_p8 }
  0x17   :  { %131 = shalt.err (!%p128_p10)
}
  0x18   :  { %s132_s30 = scalar_lea.vmem %s26_s12, 256  ;;  %p137_p12 = scmp.lt.s32.totalorder %s26_s12, %s26_s12 }
  0x19   :  { %p133_p11 = scmp.ne.s32.totalorder %s26_s12, %s132_s30  ;;  %p138_p13 = scmp.lt.s32.totalorder %s132_s30, %s132_s30 }
  0x1b   :  { %p139_p0 = por %p138_p13, %p137_p12 }
  0x1d   :  { %p140_p1 = pnand %p139_p0, %p133_p11 }
  0x1f   :  { %143 = shalt.err (!%p140_p1)
}
  0x20   :  { %28 = dma.hbm_to_vmem [thread:$0]  %s199_s1, 256, %s26_s12, [#allocation7]  }
  0x21   :  { %144 = dma.done.wait [#allocation5], 256  }
  0x22   :  { %145 = vsyncadd [#allocation5], 4294967040 }
  0x23   :  { %146 = dma.done.wait [#allocation7], 256  }
  0x24   :  { %147 = vsyncadd [#allocation7], 4294967040  ;;  %vm39_vm0 = vcmask 7168   ;;  %v150_v0 = vmov 0.0   ;;  %v42_v1 = vld [vmem:[#allocation4] sm:$0xff]  ;;  %v43_v2 = vld [vmem:[#allocation4 + $0x8] sm:$0xff] }
  0x25   :  { %41 = vst.msk [vmem:[#allocation3] sm:$0xff] %vm39_vm0, %v150_v0  ;;  %40 = vst.msk [vmem:[#allocation2] sm:$0xff] %vm39_vm0, %v150_v0  ;;  %v46_v3 = vld [vmem:[#allocation6] sm:$0xff]  ;;  %v87_v4 = vtrunc.f32 %v42_v1  ;;  %v89_v5 = vtrunc.f32 %v43_v2  ;;  %v47_v6 = vld [vmem:[#allocation6 + $0x8] sm:$0xff] }
  0x26   :  { %v91_v7 = vtrunc.f32 %v46_v3  ;;  %v93_v8 = vtrunc.f32 %v47_v6 }
  0x27   :  { %v88_v9 = vcvt.f32.s32 %v87_v4  ;;  %v90_v10 = vcvt.f32.s32 %v89_v5 }
  0x28   :  { %v92_v11 = vcvt.f32.s32 %v91_v7  ;;  %v94_v12 = vcvt.f32.s32 %v93_v8 }
  0x2a   :  { %v62_v13 = vor.u32 %v92_v11, %v88_v9  ;;  %v51_v14 = vand.u32 %v92_v11, %v88_v9  ;;  %v63_v15 = vor.u32 %v94_v12, %v90_v10  ;;  %v52_v16 = vand.u32 %v94_v12, %v90_v10 }
  0x2c   :  { %v64_v17 = vcvt.s32.f32 %v62_v13  ;;  %v65_v18 = vcvt.s32.f32 %v63_v15  ;;  %v53_v19 = vcvt.s32.f32 %v51_v14  ;;  %v54_v20 = vcvt.s32.f32 %v52_v16  ;;  %v61_v23 = vld [vmem:[#allocation3] sm:$0xff]  ;;  %v50_v26 = vld [vmem:[#allocation2] sm:$0xff] }
  0x2e   :  { %v66_v21 = vadd.f32 %v65_v18, %v64_v17  ;;  %v55_v22 = vadd.f32 %v54_v20, %v53_v19 }
  0x30   :  { %67 = vadd.xlane.f32.xlu0 %v66_v21 }
  0x34   :  { %56 = vadd.xlane.f32.xlu0 %v55_v22 }
  0xbd   :  { %v68_v24 = vpop.xlane.xlu0 %67 }
  0xbe   :  { %v69_v25 = vadd.f32 %v68_v24, %v61_v23 }
  0xc0   :  { %70 = vst.msk [vmem:[#allocation3] sm:$0xff] %vm39_vm0, %v69_v25 }
  0xc1   :  { %v57_v27 = vpop.xlane.xlu0 %56 }
  0xc2   :  { %v58_v28 = vadd.f32 %v57_v27, %v50_v26 }
  0xc4   :  { %60 = vst.msk [vmem:[#allocation2] sm:$0xff] %vm39_vm0, %v58_v28 }
  0xc7   :  { %v76_v29 = vld [vmem:[#allocation3] sm:$0xff] }
  0xc8   :  { %v77_v30 = vadd.f32 1e-06, %v76_v29 }
  0xca   :  { %98 = vrcp.f32 %v77_v30 }
  0xcb   :  { %v74_v31 = vld [vmem:[#allocation2] sm:$0xff] }
  0xcc   :  { %v75_v32 = vadd.f32 1e-06, %v74_v31 }
  0xd4   :  { %v99_v33 = vpop.eup %98 }
  0xd5   :  { %v79_v34 = vmul.f32 %v99_v33, %v75_v32 }
  0xd7   :  { %80 = vst.msk [vmem:[%s200_s2] sm:$0xff] %vm39_vm0, %v79_v34 }
  0xd8   :  { %85 = vsyncpa [#allocation5], 1 }
  0xd9   :  { %86 = vsyncpa [#allocation7], 1 }

</bundles_post_ra>
